<compile_context>
chip_gen: v7x
topology: tpu7x:2x2x1
jax: 0.10.0
libtpu: 0.0.40
codegen_flags: <defaults>
</compile_context>

<pallas_src>
import jax
import jax.numpy as jnp
from jax.experimental import pallas as pl
from jax.experimental.pallas import tpu as pltpu

IN_FEATURES = 1      # int(np.prod(point_shape)) with point_shape = (1,)
HIDDEN = 64
OUT_FEATURES = 1
NEG_SLOPE = 0.2

_LANE = 128
_MAX_TB = 4096       # batch tile (lanes per grid step); multiple of 128, VMEM-friendly


def _disc_kernel(x_ref, p_ref, o_ref):
    """Batch-on-lanes forward for one batch tile.

    x_ref : (1, TB)      f32  batch tile (batch mapped to lanes)
    p_ref : (HIDDEN, 4)  f32  packed params: [:,0]=w1, [:,1]=b1, [:,2]=w2, [:,3]=b2 (bcast)
    o_ref : (1, TB)      f32  lane-dense output tile
    """
    x = x_ref[...]                        # (1, TB)
    w1 = p_ref[:, 0:1]                    # (HIDDEN, 1)
    b1 = p_ref[:, 1:2]                    # (HIDDEN, 1)
    w2 = p_ref[:, 2:3]                    # (HIDDEN, 1)
    b2 = p_ref[0:1, 3:4]                  # (1, 1)

    # Linear(1 -> 64): outer product on the VPU (no MXU push/pop for K=1).
    h = w1 * x + b1                       # (HIDDEN, TB)
    # LeakyReLU(negative_slope=0.2)
    h = jnp.where(h > 0, h, NEG_SLOPE * h)
    # Linear(64 -> 1): elementwise multiply + sublane reduce (no MXU for N=1).
    y = jnp.sum(h * w2, axis=0, keepdims=True) + b2   # (1, TB)
    o_ref[...] = y.astype(o_ref.dtype)


def _round_up(n, m):
    return ((n + m - 1) // m) * m


def discriminator_forward(x, w1, b1, w2, b2):
    """Forward pass of the WGAN Discriminator.

    x  : (B, ...) flattening to (B, IN_FEATURES) f32
    w1 : (IN_FEATURES, HIDDEN)   (PyTorch weight, pre-transposed)
    b1 : (HIDDEN,) or (1, HIDDEN)
    w2 : (HIDDEN, OUT_FEATURES)
    b2 : scalar / (OUT_FEATURES,) / (1, OUT_FEATURES)
    returns (B, OUT_FEATURES) f32
    """
    B = x.shape[0]
    x2 = x.reshape(B, -1).astype(jnp.float32)
    assert x2.shape[1] == IN_FEATURES == 1, "point_shape=(1,) => exactly 1 input feature"

    # Pack all parameters into one (HIDDEN, 4) tile -> a single resident DMA.
    params = jnp.stack(
        [
            w1.reshape(HIDDEN).astype(jnp.float32),
            b1.reshape(HIDDEN).astype(jnp.float32),
            w2.reshape(HIDDEN).astype(jnp.float32),
            jnp.full((HIDDEN,), jnp.asarray(b2, jnp.float32).reshape(-1)[0]),
        ],
        axis=1,
    )  # (HIDDEN, 4)

    # Batch-on-lanes layout: (B, 1) -> lane-dense (1, B_pad), padded to the tile size.
    b_pad128 = _round_up(max(B, 1), _LANE)
    tb = min(_MAX_TB, b_pad128)
    b_pad = _round_up(b_pad128, tb)
    xb = jnp.zeros((1, b_pad), jnp.float32).at[0, :B].set(x2[:, 0])

    grid = (b_pad // tb,)
    out = pl.pallas_call(
        _disc_kernel,
        out_shape=jax.ShapeDtypeStruct((1, b_pad), jnp.float32),
        grid=grid,
        in_specs=[
            pl.BlockSpec((1, tb), lambda i: (0, i)),        # batch tile (lane-dense)
            pl.BlockSpec((HIDDEN, 4), lambda i: (0, 0)),    # packed params, VMEM-resident
        ],
        out_specs=pl.BlockSpec((1, tb), lambda i: (0, i)),  # lane-dense output tile
        compiler_params=pltpu.CompilerParams(
            dimension_semantics=("parallel",),              # batch axis shardable across TCs (v7x)
        ),
    )(xb, params)

    # Restore the external (B, 1) contract.
    return out[0, :B].reshape(B, OUT_FEATURES)


def init_params(key):
    """Deterministic init mimicking PyTorch Linear default: U(-1/sqrt(fan_in), 1/sqrt(fan_in))."""
    k1, k2, k3, k4 = jax.random.split(key, 4)
    bound1 = 1.0 / (IN_FEATURES ** 0.5)
    bound2 = 1.0 / (HIDDEN ** 0.5)
    w1 = jax.random.uniform(k1, (IN_FEATURES, HIDDEN), jnp.float32, -bound1, bound1)
    b1 = jax.random.uniform(k2, (1, HIDDEN), jnp.float32, -bound1, bound1)
    w2 = jax.random.uniform(k3, (HIDDEN, OUT_FEATURES), jnp.float32, -bound2, bound2)
    b2 = jax.random.uniform(k4, (1, OUT_FEATURES), jnp.float32, -bound2, bound2)
    return w1, b1, w2, b2


if __name__ == "__main__":
    key = jax.random.PRNGKey(0)
    key_x, key_p = jax.random.split(key)

    B = 8
    # Module flattens its input to (B, prod(point_shape)) = (B, 1); feed (B, 1) directly.
    x = jax.random.normal(key_x, (B, IN_FEATURES), jnp.float32)
    w1, b1, w2, b2 = init_params(key_p)

    out = discriminator_forward(x, w1, b1, w2, b2)
    out = jax.block_until_ready(out)

    # Pure-JAX reference check of the same math.
    h_ref = x @ w1 + b1
    h_ref = jnp.where(h_ref > 0, h_ref, NEG_SLOPE * h_ref)
    y_ref = h_ref @ w2 + b2
    assert out.shape == (B, OUT_FEATURES)
    assert jnp.allclose(out, y_ref, atol=1e-5, rtol=1e-5)

    print("KERNEL_OK")
</pallas_src>

<mosaic_0001>
module attributes {stable_mosaic.version = 11 : i64} {
  func.func @_disc_kernel(%arg0: i32, %arg1: memref<1x128xf32, #tpu.memory_space<vmem>>, %arg2: memref<64x4xf32, #tpu.memory_space<vmem>>, %arg3: memref<1x128xf32, #tpu.memory_space<vmem>>) attributes {dimension_semantics = [#tpu.dimension_semantics<parallel>], iteration_bounds = array<i64: 1>, scalar_prefetch = 0 : i64, scratch_operands = 0 : i64, tpu.core_type = #tpu.core_type<tc>, window_params = [{transform_indices = @transform_0, window_bounds = array<i64: 1, 128>}, {pipeline_mode = #tpu.pipeline_mode<synchronous>, transform_indices = @transform_1, window_bounds = array<i64: 64, 4>}, {transform_indices = @transform_2, window_bounds = array<i64: 1, 128>}]} {
    %c0 = arith.constant 0 : index
    %c0_0 = arith.constant 0 : index
    %0 = vector.load %arg1[%c0, %c0_0] : memref<1x128xf32, #tpu.memory_space<vmem>>, vector<1x128xf32>
    %c0_1 = arith.constant 0 : index
    %c0_2 = arith.constant 0 : index
    %1 = vector.load %arg2[%c0_1, %c0_2] : memref<64x4xf32, #tpu.memory_space<vmem>>, vector<64x1xf32>
    %c0_3 = arith.constant 0 : index
    %c1 = arith.constant 1 : index
    %2 = vector.load %arg2[%c0_3, %c1] : memref<64x4xf32, #tpu.memory_space<vmem>>, vector<64x1xf32>
    %c0_4 = arith.constant 0 : index
    %c2 = arith.constant 2 : index
    %3 = vector.load %arg2[%c0_4, %c2] : memref<64x4xf32, #tpu.memory_space<vmem>>, vector<64x1xf32>
    %c0_5 = arith.constant 0 : index
    %c3 = arith.constant 3 : index
    %4 = vector.load %arg2[%c0_5, %c3] : memref<64x4xf32, #tpu.memory_space<vmem>>, vector<1x1xf32>
    %5 = vector.broadcast %1 : vector<64x1xf32> to vector<64x128xf32>
    %6 = vector.broadcast %0 : vector<1x128xf32> to vector<64x128xf32>
    %7 = arith.mulf %5, %6 : vector<64x128xf32>
    %8 = vector.broadcast %2 : vector<64x1xf32> to vector<64x128xf32>
    %9 = arith.addf %7, %8 : vector<64x128xf32>
    %cst = arith.constant 0.000000e+00 : f32
    %10 = vector.broadcast %cst : f32 to vector<64x128xf32>
    %11 = arith.cmpf ogt, %9, %10 : vector<64x128xf32>
    %cst_6 = arith.constant 2.000000e-01 : f32
    %12 = vector.broadcast %cst_6 : f32 to vector<64x128xf32>
    %13 = arith.mulf %12, %9 : vector<64x128xf32>
    %14 = arith.select %11, %9, %13 : vector<64x128xi1>, vector<64x128xf32>
    %15 = vector.broadcast %3 : vector<64x1xf32> to vector<64x128xf32>
    %16 = arith.mulf %14, %15 : vector<64x128xf32>
    %cst_7 = arith.constant dense<0.000000e+00> : vector<128xf32>
    %17 = vector.multi_reduction <add>, %16, %cst_7 [0] : vector<64x128xf32> to vector<128xf32>
    %18 = vector.shape_cast %17 : vector<128xf32> to vector<1x128xf32>
    %19 = vector.broadcast %4 : vector<1x1xf32> to vector<1x128xf32>
    %20 = arith.addf %18, %19 : vector<1x128xf32>
    %c0_8 = arith.constant 0 : index
    %c0_9 = arith.constant 0 : index
    %21 = vector.load %arg3[%c0_8, %c0_9] : memref<1x128xf32, #tpu.memory_space<vmem>>, vector<1x128xf32>
    tpu.vector_store %arg3[%c0_8, %c0_9], %20 {strides = array<i32>} : memref<1x128xf32, #tpu.memory_space<vmem>>, vector<1x128xf32>,
    return
  }
  func.func @transform_0(%arg0: i32) -> (i32, i32) {
    %c0_i32 = arith.constant 0 : i32
    %c0_i32_0 = arith.constant 0 : i32
    return %c0_i32, %arg0 : i32, i32
  }
  func.func @transform_1(%arg0: i32) -> (i32, i32) {
    %c0_i32 = arith.constant 0 : i32
    %c0_i32_0 = arith.constant 0 : i32
    %c0_i32_1 = arith.constant 0 : i32
    return %c0_i32, %c0_i32_0 : i32, i32
  }
  func.func @transform_2(%arg0: i32) -> (i32, i32) {
    %c0_i32 = arith.constant 0 : i32
    %c0_i32_0 = arith.constant 0 : i32
    return %c0_i32, %arg0 : i32, i32
  }
}

</mosaic_0001>

<bundles_post_ra>
// kernel: tpu_custom_call.1
= control target key start
LH: loop header
LB: loop body
LE: loop exit
PB: predicated region body
PF: predicated region fallthrough
CT: control target
= control target key end

     0   :  { %v261_v2 = vmov 0   ;;  %s323_s0 = inlined_call_operand.vmem [shape: f32[1,128], index: 0, kind: input, shape index: {}]   ;;  %s324_s1 = inlined_call_operand.vmem [shape: f32[64,4], index: 1, kind: input, shape index: {}]   ;;  %s325_s2 = inlined_call_operand.hbm [shape: f32[1,128], index: 2, kind: output, shape index: {}]  }
   0x1   :  { %v15_v0 = vld [vmem:[%s324_s1 + $0x10] sm:$0xff]  ;;  %v13_v1 = vld [vmem:[%s324_s1] sm:$0xff]  ;;  %221 = vset.pattern.permute.xlu1 %v261_v2  ;;  %220 = vset.pattern.permute.xlu0 %v261_v2  ;;  %v14_v3 = vld [vmem:[%s324_s1 + $0x8] sm:$0xff] }
   0x2   :  { %34 = vperm.xlu1 %221, %v15_v0   ;;  %24 = vperm.xlu0 %220, %v13_v1  }
   0x3   :  { %7 = vsyncpa [#allocation3], 0  ;;  %v262_v4 = vmov 1   ;;  %v17_v5 = vld [vmem:[%s324_s1 + $0x20] sm:$0xff]  ;;  %v16_v6 = vld [vmem:[%s324_s1 + $0x18] sm:$0xff]  ;;  %v263_v7 = vmov 2  }
   0x4   :  { %v18_v8 = vld [vmem:[%s324_s1 + $0x28] sm:$0xff]  ;;  %v19_v9 = vld [vmem:[%s324_s1 + $0x30] sm:$0xff]  ;;  %v20_v10 = vld [vmem:[%s324_s1 + $0x38] sm:$0xff]  ;;  %v264_v11 = vmov 3  }
   0x5   :  { %v21_v12 = vld [vmem:[%s324_s1] sm:$0x1] }
   0x6   :  { %222 = vset.pattern.permute.xlu1 %v262_v4  ;;  %29 = vperm.xlu0 %220, %v14_v3   ;;  %v214_v25 = vld [vmem:[%s323_s0] ss:$0 sm:$0xff]  ;;  %s265_s0 = smov [#allocation2]  }
   0x7   :  { %77 = vperm.xlu1 %222, %v13_v1   ;;  %s206_s1 = sshll.u32 %s265_s0, 4  ;;  %s207_s1 = int_to_ptr.vmem [resolvable:$true] %s206_s1 }
   0x8   :  { %s237_s29 = scalar_lea.vmem %s207_s1, 16  ;;  %s241_s30 = scalar_lea.vmem %s207_s1, 32 }
   0x9   :  { %p238_p0 = scmp.ne.s32.totalorder %s207_s1, %s237_s29  ;;  %p242_p1 = scmp.lt.s32.totalorder %s207_s1, %s207_s1 }
   0xa   :  { %44 = vperm.xlu0 %220, %v17_v5   ;;  %p243_p2 = scmp.lt.s32.totalorder %s241_s30, %s237_s29 }
   0xb   :  { %223 = vset.pattern.permute.xlu1 %v261_v2 }
   0xc   :  { %39 = vperm.xlu1 %223, %v16_v6   ;;  %p244_p3 = por %p243_p2, %p242_p1 }
   0xe   :  { %226 = vset.pattern.permute.xlu0 %v263_v7  ;;  %p245_p4 = pnand %p244_p3, %p238_p0 }
   0xf   :  { %145 = vperm.xlu0 %226, %v14_v3  }
  0x10   :  { %224 = vset.pattern.permute.xlu1 %v262_v4 }
  0x11   :  { %85 = vperm.xlu1 %224, %v15_v0  }
  0x13   :  { %149 = vperm.xlu0 %226, %v15_v0  }
  0x15   :  { %89 = vperm.xlu1 %224, %v16_v6  }
  0x17   :  { %229 = vset.pattern.permute.xlu0 %v262_v4 }
  0x18   :  { %81 = vperm.xlu0 %229, %v14_v3  }
  0x19   :  { %225 = vset.pattern.permute.xlu1 %v263_v7 }
  0x1a   :  { %141 = vperm.xlu1 %225, %v13_v1  }
  0x1c   :  { %97 = vperm.xlu0 %229, %v18_v8  }
  0x1e   :  { %227 = vset.pattern.permute.xlu1 %v261_v2 }
  0x1f   :  { %49 = vperm.xlu1 %227, %v18_v8  }
  0x20   :  { %101 = vperm.xlu0 %229, %v19_v9  }
  0x23   :  { %228 = vset.pattern.permute.xlu1 %v262_v4 }
  0x24   :  { %93 = vperm.xlu1 %228, %v17_v5   ;;  %105 = vperm.xlu0 %229, %v20_v10  }
  0x28   :  { %230 = vset.pattern.permute.xlu1 %v261_v2  ;;  %234 = vset.pattern.permute.xlu0 %v263_v7 }
  0x29   :  { %54 = vperm.xlu1 %230, %v19_v9   ;;  %165 = vperm.xlu0 %234, %v19_v9  }
  0x2d   :  { %231 = vset.pattern.permute.xlu1 %v263_v7  ;;  %236 = vset.pattern.permute.xlu0 %v264_v11 }
  0x2e   :  { %153 = vperm.xlu1 %231, %v16_v6  }
  0x32   :  { %232 = vset.pattern.permute.xlu1 %v261_v2 }
  0x33   :  { %59 = vperm.xlu1 %232, %v20_v10  }
  0x37   :  { %233 = vset.pattern.permute.xlu1 %v263_v7 }
  0x38   :  { %157 = vperm.xlu1 %233, %v17_v5  }
  0x3c   :  { %161 = vperm.xlu1 %233, %v18_v8  }
  0x40   :  { %169 = vperm.xlu1 %233, %v20_v10  }
  0x44   :  { %235 = vset.pattern.permute.xlu1 %v264_v11 }
  0x45   :  { %195 = vperm.xlu1 %235, %v21_v12  }
  0x81   :  { %v35_v13 = vpop.permute.xlu1 %34  ;;  %v25_v14 = vpop.permute.xlu0 %24 }
  0x82   :  { %v68_v29 = vmul.f32 %v214_v25, %v25_v14  ;;  %v70_v31 = vmul.f32 %v214_v25, %v35_v13 }
  0x85   :  { %v30_v16 = vpop.permute.xlu0 %29 }
  0x86   :  { %v78_v15 = vpop.permute.xlu1 %77  ;;  %v69_v26 = vmul.f32 %v214_v25, %v30_v16 }
  0x87   :  { %v108_v33 = vadd.f32 %v78_v15, %v68_v29 }
  0x89   :  { %v45_v18 = vpop.permute.xlu0 %44  ;;  %v124_v38 = vmul.f32 0.2, %v108_v33  ;;  %vm116_vm1 = vcmp.gt.f32.partialorder %v108_v33, 0.0 }
  0x8a   :  { %v72_v39 = vmul.f32 %v214_v25, %v45_v18 }
  0x8b   :  { %v40_v17 = vpop.permute.xlu1 %39  ;;  %v132_v50 = vsel %vm116_vm1, %v108_v33, %v124_v38 }
  0x8c   :  { %v71_v36 = vmul.f32 %v214_v25, %v40_v17 }
  0x8e   :  { %v146_v21 = vpop.permute.xlu0 %145 }
  0x90   :  { %v86_v19 = vpop.permute.xlu1 %85 }
  0x91   :  { %v110_v35 = vadd.f32 %v86_v19, %v70_v31 }
  0x92   :  { %v150_v23 = vpop.permute.xlu0 %149 }
  0x93   :  { %v126_v43 = vmul.f32 0.2, %v110_v35  ;;  %vm118_vm2 = vcmp.gt.f32.partialorder %v110_v35, 0.0 }
  0x94   :  { %v90_v20 = vpop.permute.xlu1 %89 }
  0x95   :  { %v111_v40 = vadd.f32 %v90_v20, %v71_v36  ;;  %v134_v51 = vsel %vm118_vm2, %v110_v35, %v126_v43 }
  0x96   :  { %v174_v61 = vmul.f32 %v150_v23, %v134_v51 }
  0x97   :  { %v82_v27 = vpop.permute.xlu0 %81  ;;  %v127_v49 = vmul.f32 0.2, %v111_v40  ;;  %vm119_vm3 = vcmp.gt.f32.partialorder %v111_v40, 0.0 }
  0x98   :  { %v109_v30 = vadd.f32 %v82_v27, %v69_v26 }
  0x99   :  { %v142_v22 = vpop.permute.xlu1 %141  ;;  %v135_v60 = vsel %vm119_vm3, %v111_v40, %v127_v49 }
  0x9a   :  { %v125_v34 = vmul.f32 0.2, %v109_v30  ;;  %vm117_vm0 = vcmp.gt.f32.partialorder %v109_v30, 0.0  ;;  %v172_v52 = vmul.f32 %v142_v22, %v132_v50 }
  0x9b   :  { %v98_v37 = vpop.permute.xlu0 %97 }
  0x9c   :  { %v133_v41 = vsel %vm117_vm0, %v109_v30, %v125_v34 }
  0x9d   :  { %v173_v48 = vmul.f32 %v146_v21, %v133_v41 }
  0x9e   :  { %v50_v24 = vpop.permute.xlu1 %49 }
  0x9f   :  { %v73_v44 = vmul.f32 %v214_v25, %v50_v24  ;;  %v102_v46 = vpop.permute.xlu0 %101  ;;  %v180_v58 = vadd.f32 %v173_v48, %v172_v52 }
  0xa1   :  { %v113_v54 = vadd.f32 %v98_v37, %v73_v44  ;;  %v181_v4 = vadd.f32 %v180_v58, %v174_v61 }
  0xa3   :  { %v94_v28 = vpop.permute.xlu1 %93  ;;  %v106_v59 = vpop.permute.xlu0 %105  ;;  %v129_v63 = vmul.f32 0.2, %v113_v54  ;;  %vm121_vm6 = vcmp.gt.f32.partialorder %v113_v54, 0.0 }
  0xa4   :  { %v112_v45 = vadd.f32 %v94_v28, %v72_v39 }
  0xa5   :  { %v137_v10 = vsel %vm121_vm6, %v113_v54, %v129_v63 }
  0xa6   :  { %v128_v55 = vmul.f32 0.2, %v112_v45  ;;  %vm120_vm4 = vcmp.gt.f32.partialorder %v112_v45, 0.0 }
  0xa8   :  { %v55_v32 = vpop.permute.xlu1 %54  ;;  %v136_v3 = vsel %vm120_vm4, %v112_v45, %v128_v55  ;;  %v166_v7 = vpop.permute.xlu0 %165 }
  0xa9   :  { %v74_v47 = vmul.f32 %v214_v25, %v55_v32 }
  0xab   :  { %v114_v56 = vadd.f32 %v102_v46, %v74_v47 }
  0xad   :  { %v154_v42 = vpop.permute.xlu1 %153  ;;  %v130_v0 = vmul.f32 0.2, %v114_v56  ;;  %vm122_vm5 = vcmp.gt.f32.partialorder %v114_v56, 0.0 }
  0xae   :  { %v175_v62 = vmul.f32 %v154_v42, %v135_v60 }
  0xaf   :  { %v138_v8 = vsel %vm122_vm5, %v114_v56, %v130_v0 }
  0xb0   :  { %v182_v6 = vadd.f32 %v181_v4, %v175_v62  ;;  %v178_v14 = vmul.f32 %v166_v7, %v138_v8 }
  0xb2   :  { %v60_v53 = vpop.permute.xlu1 %59 }
  0xb3   :  { %v75_v57 = vmul.f32 %v214_v25, %v60_v53 }
  0xb5   :  { %v115_v1 = vadd.f32 %v106_v59, %v75_v57 }
  0xb7   :  { %v158_v2 = vpop.permute.xlu1 %157  ;;  %v131_v11 = vmul.f32 0.2, %v115_v1  ;;  %vm123_vm7 = vcmp.gt.f32.partialorder %v115_v1, 0.0 }
  0xb8   :  { %v176_v5 = vmul.f32 %v158_v2, %v136_v3 }
  0xb9   :  { %v139_v17 = vsel %vm123_vm7, %v115_v1, %v131_v11 }
  0xba   :  { %v183_v12 = vadd.f32 %v182_v6, %v176_v5 }
  0xbb   :  { %v162_v9 = vpop.permute.xlu1 %161 }
  0xbc   :  { %v177_v13 = vmul.f32 %v162_v9, %v137_v10 }
  0xbe   :  { %v184_v15 = vadd.f32 %v183_v12, %v177_v13 }
  0xbf   :  { %v170_v16 = vpop.permute.xlu1 %169 }
  0xc0   :  { %v179_v18 = vmul.f32 %v170_v16, %v139_v17  ;;  %v185_v19 = vadd.f32 %v184_v15, %v178_v14 }
  0xc2   :  { %v186_v20 = vadd.f32 %v185_v19, %v179_v18 }
  0xc4   :  { %v187_v21 = vrot.slane %v186_v20, 4  ;;  %v196_v26 = vpop.permute.xlu1 %195 }
  0xc6   :  { %v188_v22 = vadd.f32 %v187_v21, %v186_v20 }
  0xc8   :  { %v189_v23 = vrot.slane %v188_v22, 2 }
  0xca   :  { %v190_v24 = vadd.f32 %v189_v23, %v188_v22 }
  0xcc   :  { %v191_v25 = vrot.slane %v190_v24, 1 }
  0xce   :  { %v192_v27 = vadd.f32 %v191_v25, %v190_v24 }
  0xd0   :  { %v198_v28 = vadd.f32 %v196_v26, %v192_v27 }
  0xd2   :  { %199 = vst [vmem:[#allocation2] sm:$0x1] %v198_v28 }
  0xd3   :  { %248 = shalt.err (!%p245_p4)
}
  0xd4   :  { %s249_s5 = scalar_lea.hbm %s325_s2, 16 }
  0xd5   :  { %p250_p5 = scmp.ne.s32.totalorder %s325_s2, %s249_s5  ;;  %p253_p6 = scmp.lt.u32.totalorder %s249_s5, %s325_s2 }
  0xd7   :  { %p255_p7 = pnand %p253_p6, %p250_p5 }
  0xd9   :  { %258 = shalt.err (!%p255_p7)
}
  0xda   :  { %209 = dma.vmem_to_hbm [thread:$0]  %s207_s1, 16, %s325_s2, [#allocation3]  }
  0xdb   :  { %259 = dma.done.wait [#allocation3], 16  }
  0xdc   :  { %260 = vsyncadd [#allocation3], 4294967280 }
  0xdd   :  { %213 = vsyncpa [#allocation3], 1 }

</bundles_post_ra>
